<compile_context>
chip_gen: v7x
topology: tpu7x:2x2x1
jax: 0.10.0
libtpu: 0.0.40
codegen_flags: <defaults>
</compile_context>

<pallas_src>
import jax
import jax.numpy as jnp
from jax import lax
from jax.experimental import pallas as pl
from jax.experimental.pallas import tpu as pltpu


def _round_up(x, m):
    return ((x + m - 1) // m) * m


def _sublane_pack(itemsize):
    # Sublane packing factor: f32 -> 8, bf16/f16 -> 16, int8/fp8 -> 32.
    return {4: 8, 2: 16, 1: 32}.get(itemsize, 8)


def _tile_bytes(rows, cols, itemsize):
    """VMEM footprint of a (rows, cols) buffer after (sublane, 128) layout padding."""
    return _round_up(rows, _sublane_pack(itemsize)) * _round_up(cols, 128) * itemsize


def _vmem_capacity_bytes():
    try:
        return int(pltpu.get_tpu_info().vmem_capacity_bytes)
    except Exception:
        return 64 * 1024 * 1024  # conservative default (v7x-sized per-core VMEM)


def _choose_tiles(M, K, N, itemsize):
    """Pick (tm, tn, vmem_limit_bytes) from the chip's actual VMEM capacity."""
    capacity = _vmem_capacity_bytes()
    tile_budget = capacity // 2          # what our pipelined blocks may occupy
    vmem_limit = (capacity * 5) // 8     # scoped limit handed to Mosaic

    # Keep the whole weight resident if its (double-buffered, laid-out) size
    # fits in half the tile budget; otherwise tile num_features.
    if 2 * _tile_bytes(N, K, itemsize) <= tile_budget // 2:
        tn = N
    else:
        tn = min(512, _round_up(N, 128))
        while tn > 128 and 2 * _tile_bytes(tn, K, itemsize) > tile_budget // 2:
            tn //= 2
        tn = max(128, tn)

    # Remaining budget -> M tile (x + out, both double-buffered by the pipeline).
    resident = 2 * _tile_bytes(tn, K, itemsize) + 2 * _tile_bytes(1, tn, 4)
    avail = max(tile_budget - resident, 0)
    per_row = 2 * (_round_up(K, 128) + _round_up(tn, 128)) * itemsize
    tm = avail // max(per_row, 1)
    tm = max(8, min(int(tm), 8192))
    # Keep at least two M tiles so ("parallel", ...) can use both v7x TensorCores.
    tm = min(tm, _round_up(pl.cdiv(M, 2), 8))
    tm = min(tm, _round_up(M, 8))
    tm = max(8, (tm // 8) * 8)
    return tm, tn, vmem_limit


def _linear_kernel(x_ref, w_ref, b_ref, o_ref):
    # x_ref: (TM, K)  w_ref: (TN, K)  b_ref: (1, TN) f32  o_ref: (TM, TN)
    acc = lax.dot_general(
        x_ref[...],
        w_ref[...],
        dimension_numbers=(((1,), (1,)), ((), ())),  # x @ W^T, no transpose copy
        preferred_element_type=jnp.float32,
    )
    o_ref[...] = (acc + b_ref[...]).astype(o_ref.dtype)


def masked_time_series_forward(x, weight, bias, *, force_pallas=False,
                               block_m=None, block_n=None):
    """y = x @ weight.T + bias; x: (..., hidden), weight: (N, hidden), bias: (N,)."""
    hidden = x.shape[-1]
    num_features = weight.shape[0]
    lead_shape = x.shape[:-1]

    x2d = x.reshape(-1, hidden)  # [M, K]
    M = x2d.shape[0]
    itemsize = jnp.dtype(x.dtype).itemsize

    # Tiny problems: fixed pallas_call / DMA setup cost dominates -> plain XLA.
    if not force_pallas and M * hidden < 64 * 1024:
        y = x2d @ weight.T.astype(x.dtype) + bias.astype(x.dtype)
        return y.astype(x.dtype).reshape(*lead_shape, num_features)

    tm, tn, vmem_limit = _choose_tiles(M, hidden, num_features, itemsize)
    if block_m is not None:
        tm = max(8, (int(block_m) // 8) * 8)
    if block_n is not None:
        assert block_n == num_features or block_n % 128 == 0
        tn = int(block_n)

    grid_m = pl.cdiv(M, tm)
    grid_n = pl.cdiv(num_features, tn)

    weight_p = weight.astype(x.dtype)
    bias_p = bias.astype(jnp.float32).reshape(1, num_features)

    cost = pl.CostEstimate(
        flops=2 * M * hidden * num_features,
        transcendentals=0,
        bytes_accessed=(
            M * hidden * itemsize            # read x
            + num_features * hidden * itemsize   # read weight
            + num_features * 4               # read bias (f32)
            + M * num_features * itemsize    # write out (true width)
        ),
    )

    out = pl.pallas_call(
        _linear_kernel,
        out_shape=jax.ShapeDtypeStruct((M, num_features), x.dtype),
        grid_spec=pltpu.PrefetchScalarGridSpec(
            num_scalar_prefetch=0,
            grid=(grid_m, grid_n),
            in_specs=[
                pl.BlockSpec((tm, hidden), lambda i, j: (i, 0)),  # streamed x tiles
                pl.BlockSpec((tn, hidden), lambda i, j: (j, 0)),  # weight (resident when grid_n == 1)
                pl.BlockSpec((1, tn), lambda i, j: (0, j)),       # bias
            ],
            out_specs=pl.BlockSpec((tm, tn), lambda i, j: (i, j)),
        ),
        compiler_params=pltpu.CompilerParams(
            dimension_semantics=("parallel", "parallel"),
            vmem_limit_bytes=int(vmem_limit),
        ),
        cost_estimate=cost,
    )(x2d, weight_p, bias_p)

    return out.reshape(*lead_shape, num_features)


if __name__ == "__main__":
    # Small shapes consistent with the module: batch=2, seq=8, hidden=32, num_features=4.
    batch, seq, hidden, num_features = 2, 8, 32, 4

    key = jax.random.PRNGKey(0)
    kx, kw, kb = jax.random.split(key, 3)
    x = jax.random.normal(kx, (batch, seq, hidden), dtype=jnp.float32)
    weight = jax.random.normal(kw, (num_features, hidden), dtype=jnp.float32) * 0.1
    bias = jax.random.normal(kb, (num_features,), dtype=jnp.float32) * 0.1
    y_ref = x @ weight.T + bias

    # 1) Pallas path at the spec shape (forced past the small-shape fallback).
    y = masked_time_series_forward(x, weight, bias, force_pallas=True)
    jax.block_until_ready(y)
    assert y.shape == (batch, seq, num_features)
    assert jnp.allclose(y, y_ref, atol=1e-5, rtol=1e-5)

    # 2) Default path (small-shape XLA fallback) must also match.
    y_fb = masked_time_series_forward(x, weight, bias)
    assert jnp.allclose(y_fb, y_ref, atol=1e-5, rtol=1e-5)

    # 3) Larger shape: takes the Pallas path naturally and exercises the
    #    2-D (M, N) grid used when the weight has to be tiled.
    kx2, kw2, kb2 = jax.random.split(jax.random.PRNGKey(1), 3)
    M2, K2, N2 = 512, 256, 384
    x2 = jax.random.normal(kx2, (M2, K2), dtype=jnp.float32)
    w2 = jax.random.normal(kw2, (N2, K2), dtype=jnp.float32) * 0.05
    b2 = jax.random.normal(kb2, (N2,), dtype=jnp.float32) * 0.05
    y2 = masked_time_series_forward(x2, w2, b2, block_n=128)
    jax.block_until_ready(y2)
    y2_ref = x2 @ w2.T + b2
    assert y2.shape == (M2, N2)
    assert jnp.allclose(y2, y2_ref, atol=1e-4, rtol=1e-4)

    print("KERNEL_OK")
</pallas_src>

<mosaic_0001>
module attributes {stable_mosaic.version = 11 : i64} {
  func.func @_linear_kernel(%arg0: i32, %arg1: i32, %arg2: memref<8x32xf32, #tpu.memory_space<vmem>>, %arg3: memref<4x32xf32, #tpu.memory_space<vmem>>, %arg4: memref<1x4xf32, #tpu.memory_space<vmem>>, %arg5: memref<8x4xf32, #tpu.memory_space<vmem>>) attributes {dimension_semantics = [#tpu.dimension_semantics<parallel>, #tpu.dimension_semantics<parallel>], iteration_bounds = array<i64: 2, 1>, scalar_prefetch = 0 : i64, scratch_operands = 0 : i64, tpu.core_type = #tpu.core_type<tc>, window_params = [{transform_indices = @transform_0, window_bounds = array<i64: 8, 32>}, {transform_indices = @transform_1, window_bounds = array<i64: 4, 32>}, {transform_indices = @transform_2, window_bounds = array<i64: 1, 4>}, {transform_indices = @transform_3, window_bounds = array<i64: 8, 4>}]} {
    %c0 = arith.constant 0 : index
    %c0_0 = arith.constant 0 : index
    %0 = vector.load %arg2[%c0, %c0_0] : memref<8x32xf32, #tpu.memory_space<vmem>>, vector<8x32xf32>
    %c0_1 = arith.constant 0 : index
    %c0_2 = arith.constant 0 : index
    %1 = vector.load %arg3[%c0_1, %c0_2] : memref<4x32xf32, #tpu.memory_space<vmem>>, vector<4x32xf32>
    %cst = arith.constant dense<0.000000e+00> : vector<8x4xf32>
    %2 = tpu.matmul %0, %1, %cst {dimension_numbers = #tpu.dot_dimension_numbers<[1], [1], [0], [0], [0, 0, 1, 0], [], []>} : vector<8x32xf32>, vector<4x32xf32>, vector<8x4xf32> -> vector<8x4xf32>
    %c0_3 = arith.constant 0 : index
    %c0_4 = arith.constant 0 : index
    %3 = vector.load %arg4[%c0_3, %c0_4] : memref<1x4xf32, #tpu.memory_space<vmem>>, vector<1x4xf32>
    %4 = vector.broadcast %3 : vector<1x4xf32> to vector<8x4xf32>
    %5 = arith.addf %2, %4 : vector<8x4xf32>
    %c0_5 = arith.constant 0 : index
    %c0_6 = arith.constant 0 : index
    %6 = vector.load %arg5[%c0_5, %c0_6] : memref<8x4xf32, #tpu.memory_space<vmem>>, vector<8x4xf32>
    tpu.vector_store %arg5[%c0_5, %c0_6], %5 {strides = array<i32>} : memref<8x4xf32, #tpu.memory_space<vmem>>, vector<8x4xf32>,
    return
  }
  func.func @transform_0(%arg0: i32, %arg1: i32) -> (i32, i32) {
    %c0_i32 = arith.constant 0 : i32
    %c0_i32_0 = arith.constant 0 : i32
    return %arg0, %c0_i32 : i32, i32
  }
  func.func @transform_1(%arg0: i32, %arg1: i32) -> (i32, i32) {
    %c0_i32 = arith.constant 0 : i32
    %c0_i32_0 = arith.constant 0 : i32
    return %arg1, %c0_i32 : i32, i32
  }
  func.func @transform_2(%arg0: i32, %arg1: i32) -> (i32, i32) {
    %c0_i32 = arith.constant 0 : i32
    %c0_i32_0 = arith.constant 0 : i32
    return %c0_i32, %arg1 : i32, i32
  }
  func.func @transform_3(%arg0: i32, %arg1: i32) -> (i32, i32) {
    %c0_i32 = arith.constant 0 : i32
    return %arg0, %arg1 : i32, i32
  }
}

</mosaic_0001>

<bundles_post_ra>
// kernel: tpu_custom_call.1
= control target key start
LH: loop header
LB: loop body
LE: loop exit
PB: predicated region body
PF: predicated region fallthrough
CT: control target
= control target key end

     0   :  { %8 = vsyncpa [#allocation3], 0  ;;  %s831_s0 = inlined_call_operand.hbm [shape: f32[16,32], index: 0, kind: input, shape index: {}]   ;;  %s832_s1 = inlined_call_operand.hbm [shape: f32[4,32], index: 1, kind: input, shape index: {}]   ;;  %s833_s2 = inlined_call_operand.vmem [shape: f32[1,4], index: 2, kind: input, shape index: {}]   ;;  %s834_s3 = inlined_call_operand.vmem [shape: f32[16,4], index: 3, kind: output, shape index: {}]  }
   0x1   :  { %10 = vsyncpa [#allocation3 + $0x1], 0 }
   0x2   :  { %11 = vsyncpa [#allocation5], 0  ;;  %s665_s12 = smov 0   ;;  %s667_s13 = smov 0  }
   0x3   :  { %s669_s14 = smov 0   ;;  %s671_s15 = smov 0  }
   0x4   :  { %s673_s16 = smov 0   ;;  %s675_s17 = smov 0  }
   0x5 LB: > { %s435_s18 = sadd.s32 4294967295, %s639_s17   ;;  %p49_p0 = scmp.ne.s32.totalorder %s623_s13, %s619_s12  ;;  %s639_s17 = sphi %s675_s17, %s17_s17   ;;  %s635_s16 = sphi %s673_s16, %s853_s16   ;;  %s631_s15 = sphi %s671_s15, %s852_s15   ;;  %s627_s14 = sphi %s669_s14, %s851_s14   ;;  %s623_s13 = sphi %s667_s13, %s850_s13   ;;  %s619_s12 = sphi %s665_s12, %s849_s12  }
   0x6   : > { %p695_p1 = scmp.eq.s32.totalorder %s435_s18, 0  ;;  %p437_p2 = scmp.ge.s32.totalorder %s639_s17, 1 }
   0x7   : > { %p140_p3 = scmp.lt.s32.totalorder %s639_s17, 3  ;;  %s641_s22 = smov [#allocation4]  }
   0x8   : > { %s839_s19 = scalar_select %p695_p1, 1, 0 }
   0x9   : > { %p703_p4 = por %p695_p1, %p49_p0  ;;  %p707_p5 = pnand %p437_p2, %p140_p3 }
   0xa   : > { %s155_s23 = sshll.u32 %s641_s22, 4  ;;  %s29_s25 = sadd.s32 1, %s635_s16  ;;  %s156_s23 = int_to_ptr.vmem [resolvable:$true] %s155_s23 }
   0xb   : > { %s840_s20 = scalar_select %p703_p4, 1, 0 }
   0xc   : > { %s841_s21 = scalar_select %p707_p5, 1, 0 }
   0xd   : > { %p465_p6 = pneg %p707_p5  ;;  %s36_s26 = sadd.s32 1, %s627_s14 }
   0xe   : > { %p721_p8 = scmp.ge.s32.totalorder %s29_s25, 2  ;;  %s527_s30 = scalar_lea.hbm %s832_s1, 64 }
   0xf   : > { %p715_p7 = pnand %p465_p6, %p695_p1  ;;  %p528_p9 = scmp.ne.s32.totalorder %s832_s1, %s527_s30 }
  0x10   : > { %s843_s27 = scalar_select %p721_p8, 1, 0 }
  0x11   : > { %p529_p10 = pneg %p715_p7  ;;  %p534_p13 = scmp.lt.u32.totalorder %s527_s30, %s832_s1 }
  0x13   : > { %p530_p11 = pnand %p529_p10, %p528_p9 }
  0x15   : > { %p531_p12 = pneg %p530_p11 }
  0x17   : > { %p536_p0 = pnand %p534_p13, %p531_p12 }
  0x19   : > { %539 = shalt.err (!%p536_p0)
}
  0x1a   : > { %s540_s8 = scalar_lea.vmem %s156_s23, 64  ;;  %p548_p1 = scmp.lt.s32.totalorder %s156_s23, %s156_s23 }
  0x1b   : > { %p541_p2 = scmp.ne.s32.totalorder %s156_s23, %s540_s8  ;;  %p549_p4 = scmp.lt.s32.totalorder %s540_s8, %s540_s8 }
  0x1d   : > { %p543_p3 = pnand %p541_p2, %p529_p10  ;;  %p550_p5 = por %p549_p4, %p548_p1 }
  0x1f   : > { %p544_p6 = pneg %p543_p3 }
  0x21   : > { %p551_p8 = pnand %p550_p5, %p544_p6 }
  0x23   : > { %554 = shalt.err (!%p551_p8)
}
  0x24   : > { %468 = dma.hbm_to_vmem [thread:$0]  (!%p715_p7), %s832_s1, 64, %s156_s23, [#allocation5]  }
  0x25   : > { %p844_p9 = scmp.ne.s32.totalorder %s843_s27, 0  ;;  %p43_p1 = scmp.ne.s32.totalorder %s627_s14, %s623_s13 }
  0x26   : > { %p44_p4 = scmp.eq.s32.totalorder %s639_s17, 0  ;;  %p474_p5 = scmp.lt.s32.totalorder %s639_s17, 2 }
  0x27   : > { %s855_s25 = smov (%p844_p9, %s29_s25), 0  ;;  %s172_s12 = sand.u32 1, %s627_s14  }
  0x28   : > { %s33_s11 = ssub.s32 %s635_s16, %s855_s25  ;;  %p45_p10 = por %p44_p4, %p43_p1 }
  0x29   : > { %p34_p8 = scmp.eq.s32.totalorder %s33_s11, 0  ;;  %s442_s18 = sshll.u32 %s635_s16, 7 }
  0x2a   : > { %s441_s24 = sshll.u32 %s172_s12, 3  ;;  %s761_s23 = scalar_lea.hbm %s831_s0, %s442_s18 }
  0x2b   : > { %s756_s22 = scalar_select %p34_p8, %s627_s14, %s36_s26  }
  0x2c   : > { %s176_s27 = scalar_lea.vmem [#allocation2], %s441_s24  ;;  %p763_p7 = pnand %p474_p5, %p45_p10 }
  0x2d   : > { %s183_s30 = sshll.u32 %s176_s27, 4  ;;  %s173_s26 = scalar_lea.sflag [#allocation3], %s172_s12  ;;  %s767_s30 = int_to_ptr.vmem [resolvable:$true] %s183_s30 }
  0x2e   : > { %s555_s5 = scalar_lea.hbm %s761_s23, 128  ;;  %p557_p12 = pneg %p763_p7 }
  0x2f   : > { %p556_p11 = scmp.ne.s32.totalorder %s761_s23, %s555_s5  ;;  %s560_s8 = scalar_lea.hbm %s831_s0, 256 }
  0x30   : > { %p561_p2 = scmp.lt.u32.totalorder %s761_s23, %s831_s0  ;;  %p562_p3 = scmp.lt.u32.totalorder %s560_s8, %s555_s5 }
  0x31   : > { %p558_p13 = pnand %p557_p12, %p556_p11  ;;  %p564_p9 = scmp.lt.u32.totalorder %s555_s5, %s761_s23 }
  0x32   : > { %p563_p6 = por %p562_p3, %p561_p2 }
  0x33   : > { %p559_p0 = pneg %p558_p13 }
  0x34   : > { %p565_p1 = por %p564_p9, %p563_p6 }
  0x36   : > { %p566_p4 = pnand %p565_p1, %p559_p0 }
  0x38   : > { %569 = shalt.err (!%p566_p4)
}
  0x39   : > { %s570_s11 = scalar_lea.vmem %s767_s30, 128  ;;  %s642_s12 = smov [#allocation2]  }
  0x3a   : > { %p571_p5 = scmp.ne.s32.totalorder %s767_s30, %s570_s11  ;;  %s575_s18 = sshll.u32 %s642_s12, 4  ;;  %s576_s18 = int_to_ptr.vmem [resolvable:$false] %s575_s18 }
  0x3b   : > { %s577_s24 = scalar_lea.vmem %s576_s18, 256  ;;  %p578_p11 = scmp.lt.s32.totalorder %s767_s30, %s576_s18 }
  0x3c   : > { %p573_p8 = pnand %p571_p5, %p557_p12  ;;  %p579_p13 = scmp.lt.s32.totalorder %s577_s24, %s570_s11 }
  0x3e   : > { %p574_p10 = pneg %p573_p8  ;;  %p580_p2 = por %p579_p13, %p578_p11 }
  0x40   : > { %p581_p3 = pnand %p580_p2, %p574_p10 }
  0x42   : > { %584 = shalt.err (!%p581_p3)
}
  0x43   : > { %472 = dma.hbm_to_vmem [thread:$0]  (!%p763_p7), %s761_s23, 128, %s767_s30, %s173_s26  }
  0x44   : > { %p846_p0 = scmp.ne.s32.totalorder %s841_s21, 0 }
  0x45   : > { %s194_s28 = sand.u32 (!%p846_p0), 1, %s623_s13   ;;  %p847_p12 = scmp.ne.s32.totalorder (!%p846_p0), %s840_s20, 0 }
  0x46   : > { %192 = sbr.rel (%p846_p0) target bundleno = 301 (0x12d), region = 32  ;;  %s444_s29 = sshll.u32 (!%p846_p0), %s194_s28, 3 }
  0x47   : > { %s195_s27 = scalar_lea.sflag (!%p846_p0), [#allocation3], %s194_s28  ;;  %s198_s5 = scalar_lea.vmem (!%p846_p0), [#allocation2], %s444_s29 }
  0x4d   : > { %610 = dma.done.wait (%p847_p12), %s195_s27, 128  }
  0x4e   : > { %612 = vsyncadd (%p847_p12), %s195_s27, 4294967168  ;;  %p848_p6 = scmp.ne.s32.totalorder %s839_s19, 0 }
  0x50   : > { %614 = dma.done.wait (%p848_p6), [#allocation5], 64  }
  0x51   : > { %616 = vsyncadd (%p848_p6), [#allocation5], 4294967232  ;;  %v643_v0 = vmov 0.0   ;;  %vm644_vm0 = vmmov 0   ;;  %vm249_vm1 = vcmask 261120   ;;  %v240_v2 = vld [vmem:[%s198_s5] sm:$0xff] }
  0x52   : > { %454 = vmatprep.subr.mxu0 %v643_v0  ;;  %456 = vmatprep.mubr.msk.f32.mxu0 %vm644_vm0, %v643_v0  ;;  %v241_v1 = vld [vmem:[#allocation4] sm:$0xf]  ;;  %p233_p7 = scmp.lt.s32.totalorder %s631_s15, 1  ;;  %vm326_vm2 = vcmask 31744  }
  0x53   : > { %455 = vmatpush3.xpose.msk.msra.mxu0 %vm249_vm1, %v241_v1  ;;  %v447_v3 = vld [vmem:[%s833_s2] ss:$0 sm:$0xff] }
  0x54   : > { %s857_s15 = smov (!%p233_p7, %s631_s15), 1 }
  0x55   : > { %s446_s20 = sshll.u32 %s857_s15, 3 }
  0x56   : > { %457 = vmatmul.mubr.msk.f32.vlgmr.msra.gmra.mrb[0].mxu0 %vm249_vm1, %v240_v2  ;;  %s239_s4 = scalar_lea.vmem %s834_s3, %s446_s20 }
 0x129   : > { %v322_v4 = vpop.f32.mrb[0].mxu0 }
 0x12a   : > { %v323_v5 = vadd.f32 %v447_v3, %v322_v4  ;;  %v458_v6 = vpop.f32.mrb[1].mxu0 }
 0x12c   : > { %327 = vst.msk [vmem:[%s239_s4] sm:$0xff] %vm326_vm2, %v323_v5 }
 0x12d PF: > { %s17_s17 = sadd.s32 1, %s639_s17   ;;  %s849_s12 = smov %s623_s13 }
 0x12e   : > { %p14_p9 = scmp.ge.s32.totalorder %s17_s17, 4   ;;  %s850_s13 = smov %s627_s14 }
 0x12f   : > { %s851_s14 = smov %s756_s22  ;;  %s852_s15 = smov %s635_s16 }
 0x130   : > { %s853_s16 = smov %s855_s25  ;;  %16 = sbr.rel (!%p14_p9) target bundleno = 5 (0x5), region = 80 }
 0x137   :  { %353 = vsyncpa [#allocation3], 1 }
 0x138   :  { %355 = vsyncpa [#allocation3 + $0x1], 1 }
 0x139   :  { %356 = vsyncpa [#allocation5], 1 }

</bundles_post_ra>
